<compile_context>
chip_gen: v7x
topology: tpu7x:2x2x1
jax: 0.10.0
libtpu: 0.0.40
codegen_flags: <defaults>
</compile_context>

<pallas_src>
import jax
import jax.numpy as jnp
from jax.experimental import pallas as pl
from jax.experimental.pallas import tpu as pltpu


def mlp_kernel(x_ref, w1_ref, b1_ref, w2_ref, b2_ref, w3_ref, b3_ref, o_ref):
    out_dim = o_ref.shape[1]          # valid output features (static)

    # fc1 + ReLU  (MXU, f32 accumulation regardless of input dtype)
    h = jnp.dot(x_ref[...], w1_ref[...], preferred_element_type=jnp.float32) + b1_ref[...]
    h = jnp.maximum(h, 0.0).astype(w2_ref.dtype)

    # fc2 + ReLU
    h = jnp.dot(h, w2_ref[...], preferred_element_type=jnp.float32) + b2_ref[...]
    h = jnp.maximum(h, 0.0).astype(w3_ref.dtype)

    # fc4: narrow output, only out_cols = round_up(out_dim, 8) columns computed.
    y = jnp.dot(h, w3_ref[...], preferred_element_type=jnp.float32) + b3_ref[...]   # (TB, out_cols)

    # Lane-dense epilogue: tiny XLU transpose to (out_cols, TB), keep valid rows,
    # sigmoid only on those (exp on the EUP).  Store (out_dim, TB) — contiguous DMA.
    y_t = y.T                                             # (out_cols, TB)
    y_t = y_t[:out_dim, :]                                # (out_dim, TB)
    o_ref[0] = (1.0 / (1.0 + jnp.exp(-y_t))).astype(o_ref.dtype)


def _cdiv(a, b):
    return -(-a // b)


def _round_up(n, m):
    return ((n + m - 1) // m) * m


def _pad2(a, shape):
    return jnp.pad(a, [(0, t - s) for s, t in zip(a.shape, shape)])


def _choose_tb(batch, tb_max):
    """Batch tile: big enough to amortize per-step overhead, >=2 grid steps when
    possible (v7x megacore), minimal batch padding, lane-dense for large tiles."""
    if 2 * batch <= 256:                          # tiny batch: one grid step
        return _round_up(max(batch, 1), 8)
    n_steps = max(2, _cdiv(batch, tb_max))        # >=2 steps -> both v7x TCs get work
    tb = _round_up(_cdiv(batch, n_steps), 8)
    if tb >= 256:
        tb = _round_up(tb, 128)                   # unmasked lane-dense output stores
    return tb


def net_forward(x, params, *, compute_dtype=jnp.bfloat16, tb_max=4096):
    """x: (B, input_dim). params: dict of (in,out) weights and (1,out) biases."""
    w1, b1 = params["w1"], params["b1"]
    w2, b2 = params["w2"], params["b2"]
    w3, b3 = params["w3"], params["b3"]

    B, in_dim = x.shape
    hid = w1.shape[1]
    out_dim = w3.shape[1]

    in_p = _round_up(max(in_dim, 1), 8)           # sublane pad only — never lane-pad x
    hid_p = _round_up(hid, 128)                   # lane multiple
    out_cols = _round_up(max(out_dim, 1), 8)      # narrow fc4 (no 128-wide slab)

    TB = _choose_tb(B, tb_max)
    B_p = _round_up(B, TB)
    n_tiles = B_p // TB

    x_p = _pad2(x, (B_p, in_p)).astype(compute_dtype)
    w1_p = _pad2(w1, (in_p, hid_p)).astype(compute_dtype)
    w2_p = _pad2(w2, (hid_p, hid_p)).astype(compute_dtype)
    w3_p = _pad2(w3, (hid_p, out_cols)).astype(compute_dtype)
    # Biases stay f32: they are added to the f32 MXU accumulator.
    b1_p = _pad2(b1, (1, hid_p)).astype(jnp.float32)
    b2_p = _pad2(b2, (1, hid_p)).astype(jnp.float32)
    b3_p = _pad2(b3, (1, out_cols)).astype(jnp.float32)

    def const_spec(shape):
        return pl.BlockSpec(shape, lambda i: (0, 0))      # VMEM-resident across grid

    out_t = pl.pallas_call(
        mlp_kernel,
        out_shape=jax.ShapeDtypeStruct((n_tiles, out_dim, TB), jnp.float32),
        grid=(n_tiles,),
        in_specs=[
            pl.BlockSpec((TB, in_p), lambda i: (i, 0)),   # x: tiled along batch
            const_spec(w1_p.shape), const_spec(b1_p.shape),
            const_spec(w2_p.shape), const_spec(b2_p.shape),
            const_spec(w3_p.shape), const_spec(b3_p.shape),
        ],
        out_specs=pl.BlockSpec((1, out_dim, TB), lambda i: (i, 0, 0)),
        compiler_params=pltpu.CompilerParams(
            dimension_semantics=("parallel",),            # megacore sharding on v7x
        ),
    )(x_p, w1_p, b1_p, w2_p, b2_p, w3_p, b3_p)

    # (n_tiles, out_dim, TB) -> (B, out_dim).  Only B*out_dim values move here.
    out = jnp.transpose(out_t, (0, 2, 1)).reshape(B_p, out_dim)
    return out[:B]


def init_params(key, input_dim=5, hidden_dim=50, output_dim=1):
    """Deterministic init mimicking PyTorch Linear; weights stored (in, out)."""
    ks = jax.random.split(key, 6)

    def linear(kw, kb, fan_in, fan_out):
        bound = 1.0 / jnp.sqrt(fan_in)
        w = jax.random.uniform(kw, (fan_in, fan_out), jnp.float32, -bound, bound)
        b = jax.random.uniform(kb, (1, fan_out), jnp.float32, -bound, bound)
        return w, b

    w1, b1 = linear(ks[0], ks[1], input_dim, hidden_dim)
    w2, b2 = linear(ks[2], ks[3], hidden_dim, hidden_dim)
    w3, b3 = linear(ks[4], ks[5], hidden_dim, output_dim)
    return {"w1": w1, "b1": b1, "w2": w2, "b2": b2, "w3": w3, "b3": b3}


def reference_forward(x, p):
    h = jnp.maximum(x @ p["w1"] + p["b1"], 0.0)
    h = jnp.maximum(h @ p["w2"] + p["b2"], 0.0)
    return jax.nn.sigmoid(h @ p["w3"] + p["b3"])


if __name__ == "__main__":
    key = jax.random.PRNGKey(0)
    kx, kx2, kp = jax.random.split(key, 3)

    input_dim, hidden_dim, output_dim = 5, 50, 1
    params = init_params(kp, input_dim, hidden_dim, output_dim)

    # 1) Small batch (single grid step), strict f32 parity.
    x_small = jax.random.normal(kx, (8, input_dim), jnp.float32)
    out = jax.block_until_ready(net_forward(x_small, params, compute_dtype=jnp.float32))
    ref = reference_forward(x_small, params)
    assert out.shape == (8, output_dim)
    assert jnp.allclose(out, ref, atol=1e-5, rtol=1e-5), "f32 small-batch mismatch"

    # 2) Larger batch: 2 grid steps + batch padding, strict f32 parity.
    x_big = jax.random.normal(kx2, (200, input_dim), jnp.float32)
    out_big = jax.block_until_ready(net_forward(x_big, params, compute_dtype=jnp.float32))
    ref_big = reference_forward(x_big, params)
    assert out_big.shape == (200, output_dim)
    assert jnp.allclose(out_big, ref_big, atol=1e-5, rtol=1e-5), "f32 multi-tile mismatch"

    # 3) Default bf16 compute path (bf16 x/weights, f32 MXU accumulation).
    out_bf16 = jax.block_until_ready(net_forward(x_big, params))
    assert out_bf16.shape == (200, output_dim)
    assert jnp.allclose(out_bf16, ref_big, atol=5e-2), "bf16 mismatch"

    print("KERNEL_OK")
</pallas_src>

<mosaic_0001>
module attributes {stable_mosaic.version = 11 : i64} {
  func.func @mlp_kernel(%arg0: i32, %arg1: memref<8x8xf32, #tpu.memory_space<vmem>>, %arg2: memref<8x128xf32, #tpu.memory_space<vmem>>, %arg3: memref<1x128xf32, #tpu.memory_space<vmem>>, %arg4: memref<128x128xf32, #tpu.memory_space<vmem>>, %arg5: memref<1x128xf32, #tpu.memory_space<vmem>>, %arg6: memref<128x8xf32, #tpu.memory_space<vmem>>, %arg7: memref<1x8xf32, #tpu.memory_space<vmem>>, %arg8: memref<1x1x8xf32, #tpu.memory_space<vmem>>) attributes {dimension_semantics = [#tpu.dimension_semantics<parallel>], iteration_bounds = array<i64: 1>, scalar_prefetch = 0 : i64, scratch_operands = 0 : i64, tpu.core_type = #tpu.core_type<tc>, window_params = [{transform_indices = @transform_0, window_bounds = array<i64: 8, 8>}, {pipeline_mode = #tpu.pipeline_mode<synchronous>, transform_indices = @transform_1, window_bounds = array<i64: 8, 128>}, {pipeline_mode = #tpu.pipeline_mode<synchronous>, transform_indices = @transform_2, window_bounds = array<i64: 1, 128>}, {pipeline_mode = #tpu.pipeline_mode<synchronous>, transform_indices = @transform_3, window_bounds = array<i64: 128, 128>}, {pipeline_mode = #tpu.pipeline_mode<synchronous>, transform_indices = @transform_4, window_bounds = array<i64: 1, 128>}, {pipeline_mode = #tpu.pipeline_mode<synchronous>, transform_indices = @transform_5, window_bounds = array<i64: 128, 8>}, {pipeline_mode = #tpu.pipeline_mode<synchronous>, transform_indices = @transform_6, window_bounds = array<i64: 1, 8>}, {transform_indices = @transform_7, window_bounds = array<i64: 1, 1, 8>}]} {
    %c0 = arith.constant 0 : index
    %c0_0 = arith.constant 0 : index
    %0 = vector.load %arg1[%c0, %c0_0] : memref<8x8xf32, #tpu.memory_space<vmem>>, vector<8x8xf32>
    %c0_1 = arith.constant 0 : index
    %c0_2 = arith.constant 0 : index
    %1 = vector.load %arg2[%c0_1, %c0_2] : memref<8x128xf32, #tpu.memory_space<vmem>>, vector<8x128xf32>
    %cst = arith.constant dense<0.000000e+00> : vector<8x128xf32>
    %2 = tpu.matmul %0, %1, %cst {dimension_numbers = #tpu.dot_dimension_numbers<[1], [0], [0], [1], [0, 0, 1, 1], [], []>} : vector<8x8xf32>, vector<8x128xf32>, vector<8x128xf32> -> vector<8x128xf32>
    %c0_3 = arith.constant 0 : index
    %c0_4 = arith.constant 0 : index
    %3 = vector.load %arg3[%c0_3, %c0_4] : memref<1x128xf32, #tpu.memory_space<vmem>>, vector<1x128xf32>
    %4 = vector.broadcast %3 : vector<1x128xf32> to vector<8x128xf32>
    %5 = arith.addf %2, %4 : vector<8x128xf32>
    %cst_5 = arith.constant 0.000000e+00 : f32
    %6 = vector.broadcast %cst_5 : f32 to vector<8x128xf32>
    %7 = arith.maximumf %5, %6 : vector<8x128xf32>
    %c0_6 = arith.constant 0 : index
    %c0_7 = arith.constant 0 : index
    %8 = vector.load %arg4[%c0_6, %c0_7] : memref<128x128xf32, #tpu.memory_space<vmem>>, vector<128x128xf32>
    %cst_8 = arith.constant dense<0.000000e+00> : vector<8x128xf32>
    %9 = tpu.matmul %7, %8, %cst_8 {dimension_numbers = #tpu.dot_dimension_numbers<[1], [0], [0], [1], [0, 0, 1, 1], [], []>} : vector<8x128xf32>, vector<128x128xf32>, vector<8x128xf32> -> vector<8x128xf32>
    %c0_9 = arith.constant 0 : index
    %c0_10 = arith.constant 0 : index
    %10 = vector.load %arg5[%c0_9, %c0_10] : memref<1x128xf32, #tpu.memory_space<vmem>>, vector<1x128xf32>
    %11 = vector.broadcast %10 : vector<1x128xf32> to vector<8x128xf32>
    %12 = arith.addf %9, %11 : vector<8x128xf32>
    %cst_11 = arith.constant 0.000000e+00 : f32
    %13 = vector.broadcast %cst_11 : f32 to vector<8x128xf32>
    %14 = arith.maximumf %12, %13 : vector<8x128xf32>
    %c0_12 = arith.constant 0 : index
    %c0_13 = arith.constant 0 : index
    %15 = vector.load %arg6[%c0_12, %c0_13] : memref<128x8xf32, #tpu.memory_space<vmem>>, vector<128x8xf32>
    %cst_14 = arith.constant dense<0.000000e+00> : vector<8x8xf32>
    %16 = tpu.matmul %14, %15, %cst_14 {dimension_numbers = #tpu.dot_dimension_numbers<[1], [0], [0], [1], [0, 0, 1, 1], [], []>} : vector<8x128xf32>, vector<128x8xf32>, vector<8x8xf32> -> vector<8x8xf32>
    %c0_15 = arith.constant 0 : index
    %c0_16 = arith.constant 0 : index
    %17 = vector.load %arg7[%c0_15, %c0_16] : memref<1x8xf32, #tpu.memory_space<vmem>>, vector<1x8xf32>
    %18 = vector.broadcast %17 : vector<1x8xf32> to vector<8x8xf32>
    %19 = arith.addf %16, %18 : vector<8x8xf32>
    %20 = tpu.transpose %19, [1, 0] : vector<8x8xf32> -> vector<8x8xf32>
    %21 = vector.extract_strided_slice %20 {offsets = [0, 0], sizes = [1, 8], strides = [1, 1]} : vector<8x8xf32> to vector<1x8xf32>
    %cst_17 = arith.constant 0.000000e+00 : f32
    %22 = vector.broadcast %cst_17 : f32 to vector<1x8xf32>
    %23 = arith.subf %22, %21 : vector<1x8xf32>
    %24 = math.exp %23 : vector<1x8xf32>
    %cst_18 = arith.constant 1.000000e+00 : f32
    %25 = vector.broadcast %cst_18 : f32 to vector<1x8xf32>
    %26 = arith.addf %25, %24 : vector<1x8xf32>
    %cst_19 = arith.constant 1.000000e+00 : f32
    %27 = vector.broadcast %cst_19 : f32 to vector<1x8xf32>
    %28 = arith.divf %27, %26 : vector<1x8xf32>
    %c0_20 = arith.constant 0 : index
    %c0_21 = arith.constant 0 : index
    %c0_22 = arith.constant 0 : index
    %29 = vector.load %arg8[%c0_20, %c0_21, %c0_22] : memref<1x1x8xf32, #tpu.memory_space<vmem>>, vector<1x1x8xf32>
    %30 = vector.shape_cast %29 : vector<1x1x8xf32> to vector<1x8xf32>
    %31 = vector.shape_cast %28 : vector<1x8xf32> to vector<1x1x8xf32>
    tpu.vector_store %arg8[%c0_20, %c0_21, %c0_22], %31 {strides = array<i32>} : memref<1x1x8xf32, #tpu.memory_space<vmem>>, vector<1x1x8xf32>,
    return
  }
  func.func @transform_0(%arg0: i32) -> (i32, i32) {
    %c0_i32 = arith.constant 0 : i32
    %c0_i32_0 = arith.constant 0 : i32
    return %arg0, %c0_i32 : i32, i32
  }
  func.func @transform_1(%arg0: i32) -> (i32, i32) {
    %c0_i32 = arith.constant 0 : i32
    %c0_i32_0 = arith.constant 0 : i32
    %c0_i32_1 = arith.constant 0 : i32
    return %c0_i32, %c0_i32_0 : i32, i32
  }
  func.func @transform_2(%arg0: i32) -> (i32, i32) {
    %c0_i32 = arith.constant 0 : i32
    %c0_i32_0 = arith.constant 0 : i32
    %c0_i32_1 = arith.constant 0 : i32
    return %c0_i32, %c0_i32_0 : i32, i32
  }
  func.func @transform_3(%arg0: i32) -> (i32, i32) {
    %c0_i32 = arith.constant 0 : i32
    %c0_i32_0 = arith.constant 0 : i32
    %c0_i32_1 = arith.constant 0 : i32
    return %c0_i32, %c0_i32_0 : i32, i32
  }
  func.func @transform_4(%arg0: i32) -> (i32, i32) {
    %c0_i32 = arith.constant 0 : i32
    %c0_i32_0 = arith.constant 0 : i32
    %c0_i32_1 = arith.constant 0 : i32
    return %c0_i32, %c0_i32_0 : i32, i32
  }
  func.func @transform_5(%arg0: i32) -> (i32, i32) {
    %c0_i32 = arith.constant 0 : i32
    %c0_i32_0 = arith.constant 0 : i32
    %c0_i32_1 = arith.constant 0 : i32
    return %c0_i32, %c0_i32_0 : i32, i32
  }
  func.func @transform_6(%arg0: i32) -> (i32, i32) {
    %c0_i32 = arith.constant 0 : i32
    %c0_i32_0 = arith.constant 0 : i32
    %c0_i32_1 = arith.constant 0 : i32
    return %c0_i32, %c0_i32_0 : i32, i32
  }
  func.func @transform_7(%arg0: i32) -> (i32, i32, i32) {
    %c0_i32 = arith.constant 0 : i32
    %c0_i32_0 = arith.constant 0 : i32
    %c0_i32_1 = arith.constant 0 : i32
    return %arg0, %c0_i32, %c0_i32_0 : i32, i32, i32
  }
}

</mosaic_0001>

<bundles_post_ra>
// kernel: tpu_custom_call.1
= control target key start
LH: loop header
LB: loop body
LE: loop exit
PB: predicated region body
PF: predicated region fallthrough
CT: control target
= control target key end

     0   :  { %12 = vsyncpa [#allocation3], 0  ;;  %s781_s0 = inlined_call_operand.vmem [shape: f32[8,8], index: 0, kind: input, shape index: {}]   ;;  %s782_s1 = inlined_call_operand.hbm [shape: f32[8,128], index: 1, kind: input, shape index: {}]   ;;  %s783_s2 = inlined_call_operand.vmem [shape: f32[1,128], index: 2, kind: input, shape index: {}]   ;;  %s784_s3 = inlined_call_operand.vmem [shape: f32[128,128], index: 3, kind: input, shape index: {}]   ;;  %s785_s4 = inlined_call_operand.vmem [shape: f32[1,128], index: 4, kind: input, shape index: {}]   ;;  %s786_s5 = inlined_call_operand.vmem [shape: f32[128,8], index: 5, kind: input, shape index: {}]   ;;  %s787_s6 = inlined_call_operand.vmem [shape: f32[1,8], index: 6, kind: input, shape index: {}]   ;;  %s788_s7 = inlined_call_operand.hbm [shape: f32[1,1,8], index: 7, kind: output, shape index: {}]  }
   0x1   :  { %13 = vsyncpa [#allocation4], 0  ;;  %s585_s24 = smov [#allocation2]   ;;  %s537_s28 = scalar_lea.hbm %s782_s1, 128 }
   0x2   :  { %s22_s25 = sshll.u32 %s585_s24, 4  ;;  %p538_p0 = scmp.ne.s32.totalorder %s782_s1, %s537_s28  ;;  %s23_s25 = int_to_ptr.vmem [resolvable:$true] %s22_s25 }
   0x3   :  { %p541_p1 = scmp.lt.u32.totalorder %s537_s28, %s782_s1 }
   0x5   :  { %p543_p2 = pnand %p541_p1, %p538_p0 }
   0x7   :  { %546 = shalt.err (!%p543_p2)
}
   0x8   :  { %s547_s10 = scalar_lea.vmem %s23_s25, 128  ;;  %p552_p4 = scmp.lt.s32.totalorder %s23_s25, %s23_s25 }
   0x9   :  { %p548_p3 = scmp.ne.s32.totalorder %s23_s25, %s547_s10  ;;  %p553_p5 = scmp.lt.s32.totalorder %s547_s10, %s547_s10 }
   0xb   :  { %p554_p6 = por %p553_p5, %p552_p4 }
   0xd   :  { %p555_p7 = pnand %p554_p6, %p548_p3 }
   0xf   :  { %558 = shalt.err (!%p555_p7)
}
  0x10   :  { %25 = dma.hbm_to_vmem [thread:$0]  %s782_s1, 128, %s23_s25, [#allocation3]  }
  0x11   :  { %581 = dma.done.wait [#allocation3], 128  }
  0x12   :  { %582 = vsyncadd [#allocation3], 4294967168  ;;  %v586_v0 = vmov 0.0   ;;  %vm587_vm0 = vmmov 0   ;;  %v588_v1 = vmov 0.0|0.0   ;;  %vm48_vm1 = vcmask 64512  }
  0x13   :  { %405 = vmatprep.subr.mxu0 %v586_v0  ;;  %407 = vmatprep.mubr.msk.f32.mxu0 %vm587_vm0, %v586_v0  ;;  %v40_v2 = vld [vmem:[#allocation2] sm:$0xff]  ;;  %v124_v5 = vld [vmem:[%s784_s3 + $0x8] sm:$0xff]  ;;  %v125_v6 = vld [vmem:[%s784_s3 + $0x10] sm:$0xff]  ;;  %vm348_vm2 = vcmask 57344  }
  0x14   :  { %480 = vmatprep.subr.bf16.mxu1 %v588_v1  ;;  %442 = vmatprep.mubr.msk.f32.mxu1 %vm587_vm0, %v586_v0  ;;  %v39_v3 = vld [vmem:[%s781_s0] sm:$0xff]  ;;  %v126_v7 = vld [vmem:[%s784_s3 + $0x18] sm:$0xff]  ;;  %v128_v11 = vld [vmem:[%s784_s3 + $0x28] sm:$0xff] }
  0x15   :  { %v123_v4 = vld [vmem:[%s784_s3] sm:$0xff]  ;;  %406 = vmatpush3.msra.mxu0 %v40_v2  ;;  %v484_v9 = vpack.c.bf16 %v126_v7, %v125_v6  ;;  %v129_v13 = vld [vmem:[%s784_s3 + $0x30] sm:$0xff]  ;;  %v130_v14 = vld [vmem:[%s784_s3 + $0x38] sm:$0xff] }
  0x16   :  { %408 = vmatmul.mubr.msk.f32.vlgmr.msra.gmra.mrb[0].mxu0 %vm48_vm1, %v39_v3  ;;  %v481_v8 = vpack.c.bf16 %v124_v5, %v123_v4  ;;  %504 = vmatprep.subr.bf16.mxu0 %v588_v1  ;;  %v127_v10 = vld [vmem:[%s784_s3 + $0x20] sm:$0xff]  ;;  %v490_v15 = vpack.c.bf16 %v130_v14, %v129_v13  ;;  %v132_v17 = vld [vmem:[%s784_s3 + $0x48] sm:$0xff]  ;;  %v133_v19 = vld [vmem:[%s784_s3 + $0x50] sm:$0xff] }
  0x17   :  { %477 = vmatprep.mubr.msk.f32.mxu0 %vm587_vm0, %v586_v0  ;;  %v487_v12 = vpack.c.bf16 %v128_v11, %v127_v10  ;;  %v131_v16 = vld [vmem:[%s784_s3 + $0x40] sm:$0xff]  ;;  %v134_v20 = vld [vmem:[%s784_s3 + $0x58] sm:$0xff]  ;;  %v136_v23 = vld [vmem:[%s784_s3 + $0x68] sm:$0xff] }
  0x18   :  { %482 = vmatpush3.bf16.msra.mxu1 %v481_v8  ;;  %v493_v18 = vpack.c.bf16 %v132_v17, %v131_v16  ;;  %v496_v21 = vpack.c.bf16 %v134_v20, %v133_v19  ;;  %v135_v22 = vld [vmem:[%s784_s3 + $0x60] sm:$0xff]  ;;  %v137_v25 = vld [vmem:[%s784_s3 + $0x70] sm:$0xff]  ;;  %v138_v26 = vld [vmem:[%s784_s3 + $0x78] sm:$0xff] }
  0x19   :  { %483 = vmatprep.subr.bf16.mxu1 %v588_v1  ;;  %v499_v24 = vpack.c.bf16 %v136_v23, %v135_v22  ;;  %v502_v27 = vpack.c.bf16 %v138_v26, %v137_v25  ;;  %v217_v28 = vld [vmem:[%s786_s5] sm:$0xff]  ;;  %v218_v29 = vld [vmem:[%s786_s5 + $0x8] sm:$0xff]  ;;  %v219_v30 = vld [vmem:[%s786_s5 + $0x10] sm:$0xff] }
  0x1a   :  { %v505_v31 = vpack.c.bf16 %v218_v29, %v217_v28  ;;  %v220_v32 = vld [vmem:[%s786_s5 + $0x18] sm:$0xff]  ;;  %v221_v34 = vld [vmem:[%s786_s5 + $0x20] sm:$0xff]  ;;  %v222_v35 = vld [vmem:[%s786_s5 + $0x28] sm:$0xff] }
  0x1b   :  { %v508_v33 = vpack.c.bf16 %v220_v32, %v219_v30  ;;  %v511_v36 = vpack.c.bf16 %v222_v35, %v221_v34  ;;  %v223_v37 = vld [vmem:[%s786_s5 + $0x30] sm:$0xff]  ;;  %v224_v38 = vld [vmem:[%s786_s5 + $0x38] sm:$0xff]  ;;  %v225_v40 = vld [vmem:[%s786_s5 + $0x40] sm:$0xff] }
  0x1c   :  { %485 = vmatpush3.bf16.msra.mxu1 %v484_v9  ;;  %506 = vmatpush3.bf16.msra.mxu0 %v505_v31  ;;  %v514_v39 = vpack.c.bf16 %v224_v38, %v223_v37  ;;  %v226_v41 = vld [vmem:[%s786_s5 + $0x48] sm:$0xff]  ;;  %v227_v43 = vld [vmem:[%s786_s5 + $0x50] sm:$0xff]  ;;  %v228_v44 = vld [vmem:[%s786_s5 + $0x58] sm:$0xff] }
  0x1d   :  { %486 = vmatprep.subr.bf16.mxu1 %v588_v1  ;;  %507 = vmatprep.subr.bf16.mxu0 %v588_v1  ;;  %v517_v42 = vpack.c.bf16 %v226_v41, %v225_v40  ;;  %v520_v45 = vpack.c.bf16 %v228_v44, %v227_v43  ;;  %v229_v46 = vld [vmem:[%s786_s5 + $0x60] sm:$0xff]  ;;  %v230_v47 = vld [vmem:[%s786_s5 + $0x68] sm:$0xff]  ;;  %v231_v54 = vld [vmem:[%s786_s5 + $0x70] sm:$0xff] }
  0x1e   :  { %v523_v48 = vpack.c.bf16 %v230_v47, %v229_v46  ;;  %v365_v49 = vld [vmem:[%s783_s2] ss:$0 sm:$0xff]  ;;  %v232_v55 = vld [vmem:[%s786_s5 + $0x78] sm:$0xff] }
  0x1f   :  { %v526_v56 = vpack.c.bf16 %v232_v55, %v231_v54  ;;  %v367_v57 = vld [vmem:[%s785_s4] ss:$0 sm:$0xff]  ;;  %s589_s4 = smov [#allocation5]  }
  0x20   :  { %488 = vmatpush3.bf16.msra.mxu1 %v487_v12  ;;  %509 = vmatpush3.bf16.msra.mxu0 %v508_v33  ;;  %v368_v62 = vld [vmem:[%s787_s6] ss:$0 sm:$0xff]  ;;  %s356_s5 = sshll.u32 %s589_s4, 4  ;;  %s357_s5 = int_to_ptr.vmem [resolvable:$true] %s356_s5 }
  0x21   :  { %489 = vmatprep.subr.bf16.mxu1 %v588_v1  ;;  %510 = vmatprep.subr.bf16.mxu0 %v588_v1  ;;  %s559_s30 = scalar_lea.vmem %s357_s5, 16  ;;  %s563_s6 = scalar_lea.vmem %s357_s5, 32 }
  0x22   :  { %p560_p8 = scmp.ne.s32.totalorder %s357_s5, %s559_s30  ;;  %p564_p9 = scmp.lt.s32.totalorder %s357_s5, %s357_s5 }
  0x23   :  { %p565_p10 = scmp.lt.s32.totalorder %s563_s6, %s559_s30 }
  0x24   :  { %491 = vmatpush3.bf16.msra.mxu1 %v490_v15  ;;  %512 = vmatpush3.bf16.msra.mxu0 %v511_v36 }
  0x25   :  { %492 = vmatprep.subr.bf16.mxu1 %v588_v1  ;;  %513 = vmatprep.subr.bf16.mxu0 %v588_v1  ;;  %p566_p11 = por %p565_p10, %p564_p9 }
  0x27   :  { %p567_p12 = pnand %p566_p11, %p560_p8 }
  0x28   :  { %494 = vmatpush3.bf16.msra.mxu1 %v493_v18  ;;  %515 = vmatpush3.bf16.msra.mxu0 %v514_v39 }
  0x29   :  { %495 = vmatprep.subr.bf16.mxu1 %v588_v1  ;;  %516 = vmatprep.subr.bf16.mxu0 %v588_v1 }
  0x2c   :  { %497 = vmatpush3.bf16.msra.mxu1 %v496_v21  ;;  %518 = vmatpush3.bf16.msra.mxu0 %v517_v42 }
  0x2d   :  { %498 = vmatprep.subr.bf16.mxu1 %v588_v1  ;;  %519 = vmatprep.subr.bf16.mxu0 %v588_v1 }
  0x30   :  { %500 = vmatpush3.bf16.msra.mxu1 %v499_v24  ;;  %521 = vmatpush3.bf16.msra.mxu0 %v520_v45 }
  0x31   :  { %501 = vmatprep.subr.bf16.mxu1 %v588_v1  ;;  %522 = vmatprep.subr.bf16.mxu0 %v588_v1 }
  0x34   :  { %503 = vmatpush3.bf16.msra.mxu1 %v502_v27  ;;  %524 = vmatpush3.bf16.msra.mxu0 %v523_v48 }
  0x35   :  { %525 = vmatprep.subr.bf16.mxu0 %v588_v1 }
  0x38   :  { %527 = vmatpush3.bf16.msra.mxu0 %v526_v56 }
  0xe9   :  { %v118_v50 = vpop.f32.mrb[0].mxu0 }
  0xea   :  { %v119_v51 = vadd.f32 %v365_v49, %v118_v50  ;;  %v409_v52 = vpop.f32.mrb[1].mxu0 }
  0xec   :  { %v122_v53 = vmax.f32 %v119_v51, 0.0 }
  0xee   :  { %443 = vmatmul.mubr.f32.vlgmr.msra.gmra.mrb[0].mxu1 %v122_v53 }
 0x1c1   :  { %v212_v58 = vpop.f32.mrb[0].mxu1 }
 0x1c2   :  { %v213_v59 = vadd.f32 %v367_v57, %v212_v58  ;;  %v444_v60 = vpop.f32.mrb[1].mxu1 }
 0x1c4   :  { %v216_v61 = vmax.f32 %v213_v59, 0.0 }
 0x1c6   :  { %478 = vmatmul.mubr.f32.vlgmr.msra.gmra.mrb[2].mxu0 %v216_v61 }
 0x299   :  { %v306_v63 = vpop.f32.mrb[2].mxu0 }
 0x29a   :  { %v479_v0 = vpop.f32.mrb[3].mxu0  ;;  %v307_v1 = vadd.f32 %v368_v62, %v306_v63 }
 0x29c   :  { %310 = vxpose.xlu0.b32.start.end [1/1] (short) (narrow) %v307_v1, 8 }
 0x31c   :  { %v326_v2 = vpop.trf.xlu0 }
 0x31d   :  { %v342_v3 = vsub.f32 0.0, %v326_v2 }
 0x31f   :  { %v343_v4 = vmul.f32 1.442695, %v342_v3 }
 0x321   :  { %533 = vpow2.f32 %v343_v4 }
 0x32b   :  { %v534_v5 = vpop.eup %533 }
 0x32c   :  { %v345_v6 = vadd.f32 1.0, %v534_v5 }
 0x32e   :  { %535 = vrcp.f32 %v345_v6 }
 0x338   :  { %v536_v7 = vpop.eup %535 }
 0x339   :  { %349 = vst.msk [vmem:[#allocation5] sm:$0x1] %vm348_vm2, %v536_v7 }
 0x33a   :  { %570 = shalt.err (!%p567_p12)
}
 0x33b   :  { %s571_s10 = scalar_lea.hbm %s788_s7, 16 }
 0x33c   :  { %p572_p13 = scmp.ne.s32.totalorder %s788_s7, %s571_s10  ;;  %p575_p0 = scmp.lt.u32.totalorder %s571_s10, %s788_s7 }
 0x33e   :  { %p577_p1 = pnand %p575_p0, %p572_p13 }
 0x340   :  { %580 = shalt.err (!%p577_p1)
}
 0x341   :  { %359 = dma.vmem_to_hbm [thread:$0]  %s357_s5, 16, %s788_s7, [#allocation4]  }
 0x342   :  { %583 = dma.done.wait [#allocation4], 16  }
 0x343   :  { %584 = vsyncadd [#allocation4], 4294967280 }
 0x344   :  { %363 = vsyncpa [#allocation3], 1 }
 0x345   :  { %364 = vsyncpa [#allocation4], 1 }

</bundles_post_ra>
